<compile_context>
chip_gen: v6e
topology: v6e:2x2x1
jax: 0.10.0
libtpu: 0.0.40
codegen_flags: <defaults>
</compile_context>

<pallas_src>
import functools
import math

import jax
import jax.numpy as jnp
from jax.experimental import pallas as pl
from jax.experimental.pallas import tpu as pltpu

_LANE = 128
_SQRT_HALF = 0.7071067811865476


def _erf(z):
    # Abramowitz & Stegun 7.1.26 (max abs err ~1.5e-7 with an exact divide).
    # The divide is an EUP approx reciprocal + one Newton step, which keeps the
    # error << 1e-6 while moving the work off the binding VALU slot.
    az = jnp.abs(z)
    d = 1.0 + 0.3275911 * az
    r = pl.reciprocal(d, approx=True)
    t = r * (2.0 - d * r)                      # one Newton refinement
    poly = t * (0.254829592 + t * (-0.284496736 + t * (1.421413741
             + t * (-1.453152027 + t * 1.061405429))))
    e = 1.0 - poly * jnp.exp(-az * az)
    return jnp.where(z >= 0, e, -e)


def _cal_score_kernel(x_ref, wt_ref, bias_ref, o_ref, *, eps, inv_c):
    """One (tm, Cp) row tile: GELU(LayerNorm(x) @ wt' + bias').

    gamma/beta are folded into wt'/bias' by the wrapper; padded channel
    columns of x are zero, so only the LN divisor (inv_c = 1/true_C) needs
    the unpadded channel count.
    """
    x = x_ref[...].astype(jnp.float32)

    # LayerNorm stats as E[x^2] - mu^2: two independent XLU reductions, no
    # extra centering pass before the second reduction.
    sum_x = jnp.sum(x, axis=-1, keepdims=True)
    sum_x2 = jnp.sum(x * x, axis=-1, keepdims=True)
    mu = sum_x * inv_c
    var = jnp.maximum(sum_x2 * inv_c - mu * mu, 0.0)
    xn = (x - mu) * jax.lax.rsqrt(var + eps)

    # Linear (gamma already folded into wt'): one MXU matmul in the weight's
    # dtype (bf16 by default), f32 accumulation.
    y = jnp.dot(xn.astype(wt_ref.dtype), wt_ref[...],
                preferred_element_type=jnp.float32)
    y = y + bias_ref[...]

    # Exact GELU: 0.5 * y * (1 + erf(y / sqrt(2))).
    o_ref[...] = (0.5 * y * (1.0 + _erf(y * _SQRT_HALF))).astype(o_ref.dtype)


def cal_score_forward(x, ln_gamma, ln_beta, w, b, *, eps=1e-5,
                      block_rows=1024, matmul_dtype=jnp.bfloat16):
    """Pallas implementation of cal_score.forward: GELU(Linear(LayerNorm(x)))."""
    *lead, C = x.shape
    x2 = x.reshape(-1, C)
    R = x2.shape[0]
    f32 = jnp.float32

    # Fold the LayerNorm affine into the Linear (one-time wrapper-side ops):
    #   (xn*gamma + beta) @ W^T + b == xn @ (gamma[:,None]*W^T) + (beta @ W^T + b)
    w_t = jnp.transpose(w).astype(f32)                       # (C, C)
    wt = ln_gamma.astype(f32)[:, None] * w_t                 # (C, C)
    bias = (b.astype(f32)
            + jnp.dot(ln_beta.astype(f32), w_t,
                      precision=jax.lax.Precision.HIGHEST)).reshape(1, C)

    # Lane-dense channels: pad C to a multiple of 128 (zero weight rows/cols
    # keep the math exact; the kernel divides by the true C). Slice back after.
    Cp = ((C + _LANE - 1) // _LANE) * _LANE
    if Cp != C:
        pc = Cp - C
        x2 = jnp.pad(x2, ((0, 0), (0, pc)))
        wt = jnp.pad(wt, ((0, pc), (0, pc)))
        bias = jnp.pad(bias, ((0, 0), (0, pc)))
    wt = wt.astype(matmul_dtype)

    # Row tile: align to the dtype's sublane packing, take the biggest tile
    # <= block_rows, but keep the grid >= ~8 steps for large R so the
    # "parallel" axis can feed both v7x TensorCores.
    isz = jnp.dtype(x.dtype).itemsize
    sub = {4: 8, 2: 16, 1: 32}.get(isz, 8)
    if R <= block_rows:
        tm = R                                  # full extent (always legal)
    else:
        tm = max(sub, (block_rows // sub) * sub)
        target = ((pl.cdiv(R, 8) + sub - 1) // sub) * sub
        if target >= 256:
            tm = min(tm, target)
    grid = (pl.cdiv(R, tm),)

    wsz = jnp.dtype(matmul_dtype).itemsize
    cost = pl.CostEstimate(
        flops=2 * R * Cp * Cp + 15 * R * Cp,
        transcendentals=2 * R * Cp + R,          # exp + recip per elem, rsqrt per row
        bytes_accessed=isz * R * Cp + isz * R * Cp + wsz * Cp * Cp + 4 * Cp,
    )

    out = pl.pallas_call(
        functools.partial(_cal_score_kernel, eps=eps, inv_c=1.0 / C),
        out_shape=jax.ShapeDtypeStruct((R, Cp), x.dtype),
        grid=grid,
        in_specs=[
            pl.BlockSpec((tm, Cp), lambda i: (i, 0)),   # x rows (tiled)
            pl.BlockSpec((Cp, Cp), lambda i: (0, 0)),   # folded W^T (resident)
            pl.BlockSpec((1, Cp), lambda i: (0, 0)),    # folded bias (resident)
        ],
        out_specs=pl.BlockSpec((tm, Cp), lambda i: (i, 0)),
        compiler_params=pltpu.CompilerParams(
            dimension_semantics=("parallel",),
            vmem_limit_bytes=48 * 1024 * 1024,          # > v5e's 16 MiB default scope
        ),
        cost_estimate=cost,
    )(x2, wt, bias)

    if Cp != C:
        out = out[:, :C]
    return out.reshape(*lead, C)


def _reference(x, ln_gamma, ln_beta, w, b, eps=1e-5):
    """Plain-JAX replica of the PyTorch forward (LayerNorm -> Linear -> GELU)."""
    mu = jnp.mean(x, axis=-1, keepdims=True)
    var = jnp.mean((x - mu) ** 2, axis=-1, keepdims=True)
    xn = (x - mu) / jnp.sqrt(var + eps) * ln_gamma + ln_beta
    y = jnp.dot(xn, w.T, precision=jax.lax.Precision.HIGHEST) + b
    return jax.nn.gelu(y, approximate=False)      # exact erf GELU, like nn.GELU()


if __name__ == "__main__":
    B, N, C = 2, 8, 32

    key = jax.random.PRNGKey(0)
    kx, kg, kb, kw, kbias = jax.random.split(key, 5)
    x = jax.random.normal(kx, (B, N, C), dtype=jnp.float32)
    ln_gamma = 1.0 + 0.1 * jax.random.normal(kg, (C,), dtype=jnp.float32)
    ln_beta = 0.1 * jax.random.normal(kb, (C,), dtype=jnp.float32)
    # nn.Linear(dim, dim): weight (C, C), bias (C,)
    w = jax.random.normal(kw, (C, C), dtype=jnp.float32) * (1.0 / math.sqrt(C))
    b = 0.1 * jax.random.normal(kbias, (C,), dtype=jnp.float32)

    ref = _reference(x, ln_gamma, ln_beta, w, b)

    # Strict-accuracy path: f32 matmul operands, small block_rows so the demo
    # exercises a multi-step, pipelined grid (and the C-padding path, C=32).
    out_f32 = cal_score_forward(x, ln_gamma, ln_beta, w, b,
                                matmul_dtype=jnp.float32, block_rows=8)
    out_f32 = jax.block_until_ready(out_f32)
    assert out_f32.shape == (B, N, C)
    assert jnp.allclose(out_f32, ref, atol=1e-4, rtol=1e-4), "f32 path mismatch"

    # Default fast path: bf16 MXU operands with f32 accumulation (per review);
    # tolerance reflects bf16 operand rounding, LN/GELU math stays in f32.
    out_bf = cal_score_forward(x, ln_gamma, ln_beta, w, b, block_rows=8)
    out_bf = jax.block_until_ready(out_bf)
    assert out_bf.shape == (B, N, C)
    assert jnp.allclose(out_bf, ref, atol=5e-2, rtol=5e-2), "bf16 path mismatch"

    print("KERNEL_OK")
</pallas_src>

<mosaic_0001>
module attributes {stable_mosaic.version = 11 : i64} {
  func.func @_cal_score_kernel(%arg0: i32, %arg1: memref<8x128xf32, #tpu.memory_space<vmem>>, %arg2: memref<128x128xf32, #tpu.memory_space<vmem>>, %arg3: memref<1x128xf32, #tpu.memory_space<vmem>>, %arg4: memref<8x128xf32, #tpu.memory_space<vmem>>) attributes {dimension_semantics = [#tpu.dimension_semantics<parallel>], iteration_bounds = array<i64: 2>, scalar_prefetch = 0 : i64, scratch_operands = 0 : i64, tpu.core_type = #tpu.core_type<tc>, window_params = [{transform_indices = @transform_0, window_bounds = array<i64: 8, 128>}, {pipeline_mode = #tpu.pipeline_mode<synchronous>, transform_indices = @transform_1, window_bounds = array<i64: 128, 128>}, {pipeline_mode = #tpu.pipeline_mode<synchronous>, transform_indices = @transform_2, window_bounds = array<i64: 1, 128>}, {transform_indices = @transform_3, window_bounds = array<i64: 8, 128>}]} {
    %c0 = arith.constant 0 : index
    %c0_0 = arith.constant 0 : index
    %0 = vector.load %arg1[%c0, %c0_0] : memref<8x128xf32, #tpu.memory_space<vmem>>, vector<8x128xf32>
    %cst = arith.constant dense<0.000000e+00> : vector<8xf32>
    %1 = vector.multi_reduction <add>, %0, %cst [1] : vector<8x128xf32> to vector<8xf32>
    %2 = vector.shape_cast %1 : vector<8xf32> to vector<8x1xf32>
    %3 = arith.mulf %0, %0 : vector<8x128xf32>
    %cst_1 = arith.constant dense<0.000000e+00> : vector<8xf32>
    %4 = vector.multi_reduction <add>, %3, %cst_1 [1] : vector<8x128xf32> to vector<8xf32>
    %5 = vector.shape_cast %4 : vector<8xf32> to vector<8x1xf32>
    %cst_2 = arith.constant 3.125000e-02 : f32
    %6 = vector.broadcast %cst_2 : f32 to vector<8x1xf32>
    %7 = arith.mulf %2, %6 : vector<8x1xf32>
    %cst_3 = arith.constant 3.125000e-02 : f32
    %8 = vector.broadcast %cst_3 : f32 to vector<8x1xf32>
    %9 = arith.mulf %5, %8 : vector<8x1xf32>
    %10 = arith.mulf %7, %7 : vector<8x1xf32>
    %11 = arith.subf %9, %10 : vector<8x1xf32>
    %cst_4 = arith.constant 0.000000e+00 : f32
    %12 = vector.broadcast %cst_4 : f32 to vector<8x1xf32>
    %13 = arith.maximumf %11, %12 : vector<8x1xf32>
    %14 = vector.broadcast %7 : vector<8x1xf32> to vector<8x128xf32>
    %15 = arith.subf %0, %14 : vector<8x128xf32>
    %cst_5 = arith.constant 9.99999974E-6 : f32
    %16 = vector.broadcast %cst_5 : f32 to vector<8x1xf32>
    %17 = arith.addf %13, %16 : vector<8x1xf32>
    %18 = math.rsqrt %17 : vector<8x1xf32>
    %19 = vector.broadcast %18 : vector<8x1xf32> to vector<8x128xf32>
    %20 = arith.mulf %15, %19 : vector<8x128xf32>
    %c0_6 = arith.constant 0 : index
    %c0_7 = arith.constant 0 : index
    %21 = vector.load %arg2[%c0_6, %c0_7] : memref<128x128xf32, #tpu.memory_space<vmem>>, vector<128x128xf32>
    %cst_8 = arith.constant dense<0.000000e+00> : vector<8x128xf32>
    %22 = tpu.matmul %20, %21, %cst_8 {dimension_numbers = #tpu.dot_dimension_numbers<[1], [0], [0], [1], [0, 0, 1, 1], [], []>} : vector<8x128xf32>, vector<128x128xf32>, vector<8x128xf32> -> vector<8x128xf32>
    %c0_9 = arith.constant 0 : index
    %c0_10 = arith.constant 0 : index
    %23 = vector.load %arg3[%c0_9, %c0_10] : memref<1x128xf32, #tpu.memory_space<vmem>>, vector<1x128xf32>
    %24 = vector.broadcast %23 : vector<1x128xf32> to vector<8x128xf32>
    %25 = arith.addf %22, %24 : vector<8x128xf32>
    %cst_11 = arith.constant 5.000000e-01 : f32
    %26 = vector.broadcast %cst_11 : f32 to vector<8x128xf32>
    %27 = arith.mulf %26, %25 : vector<8x128xf32>
    %cst_12 = arith.constant 0.707106769 : f32
    %28 = vector.broadcast %cst_12 : f32 to vector<8x128xf32>
    %29 = arith.mulf %25, %28 : vector<8x128xf32>
    %30 = math.absf %29 : vector<8x128xf32>
    %cst_13 = arith.constant 0.327591091 : f32
    %31 = vector.broadcast %cst_13 : f32 to vector<8x128xf32>
    %32 = arith.mulf %31, %30 : vector<8x128xf32>
    %cst_14 = arith.constant 1.000000e+00 : f32
    %33 = vector.broadcast %cst_14 : f32 to vector<8x128xf32>
    %34 = arith.addf %33, %32 : vector<8x128xf32>
    %35 = tpu.reciprocal %34 {approx = true} : vector<8x128xf32> -> vector<8x128xf32>
    %36 = arith.mulf %34, %35 : vector<8x128xf32>
    %cst_15 = arith.constant 2.000000e+00 : f32
    %37 = vector.broadcast %cst_15 : f32 to vector<8x128xf32>
    %38 = arith.subf %37, %36 : vector<8x128xf32>
    %39 = arith.mulf %35, %38 : vector<8x128xf32>
    %cst_16 = arith.constant 1.06140542 : f32
    %40 = vector.broadcast %cst_16 : f32 to vector<8x128xf32>
    %41 = arith.mulf %39, %40 : vector<8x128xf32>
    %cst_17 = arith.constant -1.45315206 : f32
    %42 = vector.broadcast %cst_17 : f32 to vector<8x128xf32>
    %43 = arith.addf %42, %41 : vector<8x128xf32>
    %44 = arith.mulf %39, %43 : vector<8x128xf32>
    %cst_18 = arith.constant 1.42141378 : f32
    %45 = vector.broadcast %cst_18 : f32 to vector<8x128xf32>
    %46 = arith.addf %45, %44 : vector<8x128xf32>
    %47 = arith.mulf %39, %46 : vector<8x128xf32>
    %cst_19 = arith.constant -0.284496725 : f32
    %48 = vector.broadcast %cst_19 : f32 to vector<8x128xf32>
    %49 = arith.addf %48, %47 : vector<8x128xf32>
    %50 = arith.mulf %39, %49 : vector<8x128xf32>
    %cst_20 = arith.constant 0.254829586 : f32
    %51 = vector.broadcast %cst_20 : f32 to vector<8x128xf32>
    %52 = arith.addf %51, %50 : vector<8x128xf32>
    %53 = arith.mulf %39, %52 : vector<8x128xf32>
    %cst_21 = arith.constant 0.000000e+00 : f32
    %54 = vector.broadcast %cst_21 : f32 to vector<8x128xf32>
    %55 = arith.subf %54, %30 : vector<8x128xf32>
    %56 = arith.mulf %55, %30 : vector<8x128xf32>
    %57 = math.exp %56 : vector<8x128xf32>
    %58 = arith.mulf %53, %57 : vector<8x128xf32>
    %cst_22 = arith.constant 1.000000e+00 : f32
    %59 = vector.broadcast %cst_22 : f32 to vector<8x128xf32>
    %60 = arith.subf %59, %58 : vector<8x128xf32>
    %cst_23 = arith.constant 0.000000e+00 : f32
    %61 = vector.broadcast %cst_23 : f32 to vector<8x128xf32>
    %62 = arith.cmpf oge, %29, %61 : vector<8x128xf32>
    %cst_24 = arith.constant 0.000000e+00 : f32
    %63 = vector.broadcast %cst_24 : f32 to vector<8x128xf32>
    %64 = arith.subf %63, %60 : vector<8x128xf32>
    %65 = arith.select %62, %60, %64 : vector<8x128xi1>, vector<8x128xf32>
    %cst_25 = arith.constant 1.000000e+00 : f32
    %66 = vector.broadcast %cst_25 : f32 to vector<8x128xf32>
    %67 = arith.addf %66, %65 : vector<8x128xf32>
    %68 = arith.mulf %27, %67 : vector<8x128xf32>
    %c0_26 = arith.constant 0 : index
    %c0_27 = arith.constant 0 : index
    %69 = vector.load %arg4[%c0_26, %c0_27] : memref<8x128xf32, #tpu.memory_space<vmem>>, vector<8x128xf32>
    tpu.vector_store %arg4[%c0_26, %c0_27], %68 {strides = array<i32>} : memref<8x128xf32, #tpu.memory_space<vmem>>, vector<8x128xf32>,
    return
  }
  func.func @transform_0(%arg0: i32) -> (i32, i32) {
    %c0_i32 = arith.constant 0 : i32
    %c0_i32_0 = arith.constant 0 : i32
    return %arg0, %c0_i32 : i32, i32
  }
  func.func @transform_1(%arg0: i32) -> (i32, i32) {
    %c0_i32 = arith.constant 0 : i32
    %c0_i32_0 = arith.constant 0 : i32
    %c0_i32_1 = arith.constant 0 : i32
    return %c0_i32, %c0_i32_0 : i32, i32
  }
  func.func @transform_2(%arg0: i32) -> (i32, i32) {
    %c0_i32 = arith.constant 0 : i32
    %c0_i32_0 = arith.constant 0 : i32
    %c0_i32_1 = arith.constant 0 : i32
    return %c0_i32, %c0_i32_0 : i32, i32
  }
  func.func @transform_3(%arg0: i32) -> (i32, i32) {
    %c0_i32 = arith.constant 0 : i32
    %c0_i32_0 = arith.constant 0 : i32
    return %arg0, %c0_i32 : i32, i32
  }
}

</mosaic_0001>

<bundles_post_ra>
// kernel: tpu_custom_call.1
= control target key start
LH: loop header
LB: loop body
LE: loop exit
PB: predicated region body
PF: predicated region fallthrough
CT: control target
= control target key end

     0   :  { %8 = vsyncpa [#allocation3], 0  ;;  %s885_s0 = inlined_call_operand.hbm [shape: f32[16,128], index: 0, kind: input, shape index: {}]   ;;  %s886_s1 = inlined_call_operand.hbm [shape: f32[128,128], index: 1, kind: input, shape index: {}]   ;;  %s887_s2 = inlined_call_operand.vmem [shape: f32[1,128], index: 2, kind: input, shape index: {}]   ;;  %s888_s3 = inlined_call_operand.hbm [shape: f32[16,128], index: 3, kind: output, shape index: {}]  }
   0x1   :  { %10 = vsyncpa [#allocation3 + $0x1], 0 }
   0x2   :  { %11 = vsyncpa [#allocation6], 0 }
   0x3   :  { %12 = vsyncpa [#allocation4], 0 }
   0x4   :  { %14 = vsyncpa [#allocation4 + $0x1], 0  ;;  %s718_s12 = smov 0   ;;  %s720_s13 = smov 0  }
   0x5   :  { %s722_s14 = smov 0   ;;  %s724_s15 = smov 0  }
   0x6 LB: > { %s739_s16 = sadd.s32 4294967295, %s689_s15   ;;  %s433_s17 = sadd.s32 4294967294, %s689_s15   ;;  %s689_s15 = sphi %s724_s15, %s910_s15   ;;  %s685_s14 = sphi %s722_s14, %s909_s14   ;;  %s681_s13 = sphi %s720_s13, %s908_s13   ;;  %s677_s12 = sphi %s718_s12, %s907_s12  }
   0x7   : > { %p40_p0 = scmp.ne.s32.totalorder %s681_s13, %s677_s12  ;;  %p889_p1 = scmp.eq.s32.totalorder %s739_s16, 0 }
   0x8   : > { %p112_p3 = scmp.eq.s32.totalorder %s433_s17, 1  ;;  %p434_p5 = scmp.ge.s32.totalorder %s689_s15, 1 }
   0x9   : > { %p748_p4 = por %p889_p1, %p40_p0  ;;  %p119_p7 = scmp.lt.s32.totalorder %s689_s15, 3 }
   0xa   : > { %p753_p6 = por %p112_p3, %p40_p0  ;;  %s691_s21 = smov [#allocation5]  }
   0xb   : > { %s893_s18 = scalar_select %p748_p4, 1, 0 }
   0xc   : > { %s894_s19 = scalar_select %p753_p6, 1, 0 }
   0xd   : > { %p758_p8 = pnand %p434_p5, %p119_p7  ;;  %s131_s22 = sshll.u32 %s691_s21, 4  ;;  %s132_s22 = int_to_ptr.vmem [resolvable:$true] %s131_s22 }
   0xe   : > { %s772_s24 = sadd.s32 1, %s689_s15   ;;  %s27_s25 = sadd.s32 1, %s685_s14 }
   0xf   : > { %s895_s20 = scalar_select %p758_p8, 1, 0 }
  0x10   : > { %p508_p9 = pneg %p758_p8  ;;  %s24_s26 = ssub.s32 %s689_s15, %s772_s24 }
  0x11   : > { %s578_s27 = scalar_lea.vmem %s132_s22, 2048  ;;  %p586_p5 = scmp.lt.s32.totalorder %s132_s22, %s132_s22 }
  0x12   : > { %p767_p11 = pnand %p508_p9, %p889_p1  ;;  %p579_p13 = scmp.ne.s32.totalorder %s132_s22, %s578_s27 }
  0x13   : > { %p587_p7 = scmp.lt.s32.totalorder %s578_s27, %s578_s27 }
  0x14   : > { %p569_p12 = pneg %p767_p11 }
  0x15   : > { %p588_p10 = por %p587_p7, %p586_p5 }
  0x16   : > { %p581_p0 = pnand %p579_p13, %p569_p12 }
  0x18   : > { %p582_p3 = pneg %p581_p0 }
  0x1a   : > { %p589_p2 = pnand %p588_p10, %p582_p3 }
  0x1c   : > { %592 = shalt.err (!%p589_p2)
}
  0x1d   : > { %s692_s28 = smov 128   ;;  %s693_s29 = smov 8  }
  0x1e   : > { %511 = dma.hbm_to_vmem [thread:$0]  (!%p767_p11), %s886_s1, 2048, %s132_s22, [#allocation6], %s692_s28, %s692_s28, %s693_s29  }
  0x1f   : > { %p25_p9 = scmp.eq.s32.totalorder %s24_s26, 0  ;;  %p34_p12 = scmp.ne.s32.totalorder %s685_s14, %s681_s13 }
  0x20   : > { %p35_p10 = scmp.eq.s32.totalorder %s689_s15, 0  ;;  %p521_p2 = scmp.lt.s32.totalorder %s689_s15, 2 }
  0x21   : > { %s789_s5 = scalar_select %p25_p9, %s685_s14, %s27_s25  }
  0x22   : > { %p36_p13 = por %p35_p10, %p34_p12  ;;  %p897_p0 = scmp.eq.s32.totalorder %s739_s16, 1 }
  0x23   : > { %s148_s7 = sand.u32 1, %s685_s14   ;;  %s438_s8 = sshll.u32 %s689_s15, 7 }
  0x24   : > { %p793_p3 = por %p897_p0, %p34_p12  ;;  %s437_s9 = sshll.u32 %s148_s7, 3 }
  0x25   : > { %s802_s17 = scalar_lea.hbm %s885_s0, %s438_s8  ;;  %s152_s21 = scalar_lea.vmem [#allocation2], %s437_s9 }
  0x26   : > { %s898_s6 = scalar_select %p793_p3, 1, 0 }
  0x27   : > { %s159_s22 = sshll.u32 %s152_s21, 4  ;;  %p804_p11 = pnand %p521_p2, %p36_p13  ;;  %s160_s22 = int_to_ptr.vmem [resolvable:$true] %s159_s22 }
  0x28   : > { %s149_s25 = scalar_lea.sflag [#allocation3], %s148_s7  ;;  %s593_s26 = scalar_lea.hbm %s802_s17, 128 }
  0x29   : > { %p594_p5 = scmp.ne.s32.totalorder %s802_s17, %s593_s26  ;;  %p595_p7 = pneg %p804_p11 }
  0x2a   : > { %s598_s29 = scalar_lea.hbm %s885_s0, 256  ;;  %p599_p10 = scmp.lt.s32.totalorder %s802_s17, %s885_s0 }
  0x2b   : > { %p596_p9 = pnand %p595_p7, %p594_p5  ;;  %p600_p2 = scmp.lt.s32.totalorder %s598_s29, %s593_s26 }
  0x2d   : > { %p597_p12 = pneg %p596_p9  ;;  %p601_p13 = por %p600_p2, %p599_p10 }
  0x2f   : > { %p602_p0 = pnand %p601_p13, %p597_p12 }
  0x31   : > { %605 = shalt.err (!%p602_p0)
}
  0x32   : > { %s606_s8 = scalar_lea.vmem %s160_s22, 128  ;;  %s694_s7 = smov [#allocation2]  }
  0x33   : > { %p607_p1 = scmp.ne.s32.totalorder %s160_s22, %s606_s8  ;;  %s611_s9 = sshll.u32 %s694_s7, 4  ;;  %s612_s9 = int_to_ptr.vmem [resolvable:$false] %s611_s9 }
  0x34   : > { %s613_s10 = scalar_lea.vmem %s612_s9, 256  ;;  %p614_p5 = scmp.lt.s32.totalorder %s160_s22, %s612_s9 }
  0x35   : > { %p609_p6 = pnand %p607_p1, %p595_p7  ;;  %p615_p9 = scmp.lt.s32.totalorder %s613_s10, %s606_s8 }
  0x37   : > { %p610_p3 = pneg %p609_p6  ;;  %p616_p4 = por %p615_p9, %p614_p5 }
  0x39   : > { %p617_p8 = pnand %p616_p4, %p610_p3 }
  0x3b   : > { %620 = shalt.err (!%p617_p8)
}
  0x3c   : > { %515 = dma.hbm_to_vmem [thread:$0]  (!%p804_p11), %s802_s17, 128, %s160_s22, %s149_s25  }
  0x3d   : > { %p900_p12 = scmp.ne.s32.totalorder %s895_s20, 0 }
  0x3e   : > { %s825_s11 = sand.u32 (!%p900_p12), 1, %s681_s13   ;;  %p901_p1 = scmp.ne.s32.totalorder (!%p900_p12), %s893_s18, 0 }
  0x3f   : > { %168 = sbr.rel (%p900_p12) target bundleno = 504 (0x1f8), region = 32  ;;  %s440_s21 = sshll.u32 (!%p900_p12), %s825_s11, 3 }
  0x40   : > { %s171_s26 = scalar_lea.sflag (!%p900_p12), [#allocation3], %s825_s11  ;;  %s174_s27 = scalar_lea.vmem (!%p900_p12), [#allocation2], %s440_s21 }
  0x44   : > { %664 = dma.done.wait (%p901_p1), %s171_s26, 128  }
  0x45   : > { %666 = vsyncadd (%p901_p1), %s171_s26, 4294967168  ;;  %p902_p4 = scmp.eq.s32.totalorder %s739_s16, 0 }
  0x47   : > { %668 = dma.done.wait (%p902_p4), [#allocation6], 2048   ;;  %p903_p6 = pmov %p902_p4 }
  0x48   : > { %v695_v0 = vmov 0.0   ;;  %v839_v1 = vld [vmem:[%s174_s27] sm:$0xff]  ;;  %v229_v5 = vld [vmem:[#allocation5 + $0x68] sm:$0xff]  ;;  %v228_v6 = vld [vmem:[#allocation5 + $0x60] sm:$0xff]  ;;  %vm696_vm0 = vmmov 0   ;;  %s445_s17 = sshll.u32 %s739_s16, 7 }
  0x49   : > { %670 = vsyncadd (%p903_p6), [#allocation6], 4294965248  ;;  %465 = vmatprep.subr.mxu0 %v695_v0  ;;  %v231_v2 = vld [vmem:[#allocation5 + $0x78] sm:$0xff]  ;;  %v230_v3 = vld [vmem:[#allocation5 + $0x70] sm:$0xff]  ;;  %202 = vadd.xlane.f32.xlu0 %v839_v1  ;;  %v204_v4 = vmul.f32 %v839_v1, %v839_v1  ;;  %s200_s22 = scalar_lea.vmem [#allocation7], %s440_s21  ;;  %s351_s29 = scalar_lea.hbm %s888_s3, %s445_s17 }
  0x4a   : > { %466 = vmatpush3.msra.mxu0 %v231_v2  ;;  %v227_v7 = vld [vmem:[#allocation5 + $0x58] sm:$0xff]  ;;  %v226_v8 = vld [vmem:[#allocation5 + $0x50] sm:$0xff]  ;;  %v225_v9 = vld [vmem:[#allocation5 + $0x48] sm:$0xff]  ;;  %497 = vmatprep.mubr.msk.f32.mxu0 %vm696_vm0, %v695_v0  ;;  %s353_s23 = sshll.u32 %s200_s22, 4  ;;  %s340_s30 = scalar_lea.sflag [#allocation4], %s825_s11  ;;  %s354_s23 = int_to_ptr.vmem [resolvable:$true] %s353_s23 }
  0x4b   : > { %467 = vmatprep.subr.mxu0 %v695_v0  ;;  %v224_v10 = vld [vmem:[#allocation5 + $0x40] sm:$0xff]  ;;  %v223_v11 = vld [vmem:[#allocation5 + $0x38] sm:$0xff]  ;;  %v222_v12 = vld [vmem:[#allocation5 + $0x30] sm:$0xff]  ;;  %s621_s4 = scalar_lea.vmem %s354_s23, 128  ;;  %p904_p3 = scmp.ne.s32.totalorder %s898_s6, 0 }
  0x4c   : > { %468 = vmatpush3.msra.mxu0 %v230_v3  ;;  %v221_v13 = vld [vmem:[#allocation5 + $0x28] sm:$0xff]  ;;  %v220_v14 = vld [vmem:[#allocation5 + $0x20] sm:$0xff]  ;;  %v219_v15 = vld [vmem:[#allocation5 + $0x18] sm:$0xff]  ;;  %p622_p8 = scmp.ne.s32.totalorder %s354_s23, %s621_s4  ;;  %s697_s8 = smov [#allocation7]  }
  0x4d   : > { %469 = vmatprep.subr.mxu0 %v695_v0  ;;  %205 = vadd.xlane.f32.xlu0 %v204_v4  ;;  %v218_v16 = vld [vmem:[#allocation5 + $0x10] sm:$0xff]  ;;  %v217_v17 = vld [vmem:[#allocation5 + $0x8] sm:$0xff]  ;;  %v216_v18 = vld [vmem:[#allocation5] sm:$0xff]  ;;  %s625_s16 = sshll.u32 %s697_s8, 4  ;;  %s626_s16 = int_to_ptr.vmem [resolvable:$false] %s625_s16 }
  0x4e   : > { %470 = vmatpush3.msra.mxu0 %v229_v5  ;;  %v443_v30 = vld [vmem:[%s887_s2] ss:$0 sm:$0xff]  ;;  %p623_p11 = pnand %p622_p8, %p904_p3  ;;  %s627_s7 = scalar_lea.vmem %s626_s16, 256 }
  0x4f   : > { %471 = vmatprep.subr.mxu0 %v695_v0  ;;  %p628_p10 = scmp.lt.s32.totalorder %s354_s23, %s626_s16  ;;  %p629_p2 = scmp.lt.s32.totalorder %s627_s7, %s621_s4 }
  0x50   : > { %472 = vmatpush3.msra.mxu0 %v228_v6  ;;  %p624_p7 = pneg %p623_p11 }
  0x51   : > { %473 = vmatprep.subr.mxu0 %v695_v0  ;;  %p630_p13 = por %p629_p2, %p628_p10 }
  0x52   : > { %474 = vmatpush3.msra.mxu0 %v227_v7 }
  0x53   : > { %475 = vmatprep.subr.mxu0 %v695_v0  ;;  %p631_p0 = pnand %p630_p13, %p624_p7 }
  0x54   : > { %476 = vmatpush3.msra.mxu0 %v226_v8 }
  0x55   : > { %477 = vmatprep.subr.mxu0 %v695_v0 }
  0x56   : > { %478 = vmatpush3.msra.mxu0 %v225_v9 }
  0x57   : > { %479 = vmatprep.subr.mxu0 %v695_v0 }
  0x58   : > { %480 = vmatpush3.msra.mxu0 %v224_v10 }
  0x59   : > { %481 = vmatprep.subr.mxu0 %v695_v0 }
  0x5a   : > { %482 = vmatpush3.msra.mxu0 %v223_v11 }
  0x5b   : > { %483 = vmatprep.subr.mxu0 %v695_v0 }
  0x5c   : > { %484 = vmatpush3.msra.mxu0 %v222_v12 }
  0x5d   : > { %485 = vmatprep.subr.mxu0 %v695_v0 }
  0x5e   : > { %486 = vmatpush3.msra.mxu0 %v221_v13 }
  0x5f   : > { %487 = vmatprep.subr.mxu0 %v695_v0 }
  0x60   : > { %488 = vmatpush3.msra.mxu0 %v220_v14 }
  0x61   : > { %489 = vmatprep.subr.mxu0 %v695_v0 }
  0x62   : > { %490 = vmatpush3.msra.mxu0 %v219_v15 }
  0x63   : > { %491 = vmatprep.subr.mxu0 %v695_v0 }
  0x64   : > { %492 = vmatpush3.msra.mxu0 %v218_v16 }
  0x65   : > { %493 = vmatprep.subr.mxu0 %v695_v0 }
  0x66   : > { %494 = vmatpush3.msra.mxu0 %v217_v17 }
  0x67   : > { %495 = vmatprep.subr.mxu0 %v695_v0 }
  0x68   : > { %496 = vmatpush3.msra.mxu0 %v216_v18 }
  0xd2   : > { %v203_v19 = vpop.xlane.xlu0 %202 }
  0xd3   : > { %v207_v20 = vmul.f32 0.03125, %v203_v19 }
  0xd5   : > { %v209_v22 = vmul.f32 %v207_v20, %v207_v20  ;;  %v212_v27 = vsub.f32 %v839_v1, %v207_v20 }
  0xd6   : > { %v206_v21 = vpop.xlane.xlu0 %205 }
  0xd7   : > { %v208_v23 = vmul.f32 0.03125, %v206_v21 }
  0xd9   : > { %v210_v24 = vsub.f32 %v208_v23, %v209_v22 }
  0xdb   : > { %v211_v25 = vmax.f32 %v210_v24, 0.0 }
  0xdd   : > { %v213_v26 = vadd.f32 1e-05, %v211_v25 }
  0xdf   : > { %561 = vrsqrt.f32 %v213_v26 }
  0xec   : > { %v562_v28 = vpop.eup %561 }
  0xed   : > { %v215_v29 = vmul.f32 %v562_v28, %v212_v27 }
  0xef   : > { %498 = vmatmul.mubr.f32.vlgmr.msra.gmra.mxu0 %v215_v29 }
 0x1af   : > { %v305_v31 = vpop.f32.mrf.mxu0 }
 0x1b0   : > { %v306_v32 = vadd.f32 %v443_v30, %v305_v31 }
 0x1b1   : > { %v499_v33 = vpop.f32.mrf.mxu0 }
 0x1b2   : > { %v310_v34 = vmul.f32 0.70710677, %v306_v32  ;;  %v309_v59 = vmul.f32 0.5, %v306_v32 }
 0x1b4   : > { %v311_v35 = vand.u32 2147483647, %v310_v34  ;;  %vm333_vm1 = vcmp.ge.f32.partialorder %v310_v34, 0.0 }
 0x1b6   : > { %v312_v36 = vmul.f32 0.3275911, %v311_v35  ;;  %v327_v38 = vsub.f32 0.0, %v311_v35 }
 0x1b8   : > { %v313_v37 = vadd.f32 1.0, %v312_v36  ;;  %v328_v42 = vmul.f32 %v327_v38, %v311_v35 }
 0x1ba   : > { %563 = vrcp.f32 %v313_v37  ;;  %v329_v45 = vmul.f32 1.442695, %v328_v42 }
 0x1bc   : > { %565 = vpow2.f32 %v329_v45 }
 0x1c7   : > { %v564_v39 = vpop.eup %563 }
 0x1c8   : > { %v315_v40 = vmul.f32 %v564_v39, %v313_v37 }
 0x1c9   : > { %v566_v54 = vpop.eup %565 }
 0x1ca   : > { %v316_v41 = vsub.f32 2.0, %v315_v40 }
 0x1cc   : > { %v317_v43 = vmul.f32 %v564_v39, %v316_v41 }
 0x1ce   : > { %v318_v44 = vmul.f32 1.0614054, %v317_v43 }
 0x1d0   : > { %v319_v46 = vadd.f32 -1.4531521, %v318_v44 }
 0x1d2   : > { %v320_v47 = vmul.f32 %v319_v46, %v317_v43 }
 0x1d4   : > { %v321_v48 = vadd.f32 1.4214138, %v320_v47 }
 0x1d6   : > { %v322_v49 = vmul.f32 %v321_v48, %v317_v43 }
 0x1d8   : > { %v323_v50 = vadd.f32 -0.28449672, %v322_v49 }
 0x1da   : > { %v324_v51 = vmul.f32 %v323_v50, %v317_v43 }
 0x1dc   : > { %v325_v52 = vadd.f32 0.2548296, %v324_v51 }
 0x1de   : > { %v326_v53 = vmul.f32 %v325_v52, %v317_v43 }
 0x1e0   : > { %v331_v55 = vmul.f32 %v566_v54, %v326_v53 }
 0x1e2   : > { %v332_v56 = vsub.f32 1.0, %v331_v55 }
 0x1e4   : > { %v334_v57 = vsub.f32 0.0, %v332_v56 }
 0x1e6   : > { %v335_v58 = vsel %vm333_vm1, %v332_v56, %v334_v57 }
 0x1e7   : > { %v336_v60 = vadd.f32 1.0, %v335_v58 }
 0x1e9   : > { %v337_v61 = vmul.f32 %v336_v60, %v309_v59 }
 0x1eb   : > { %338 = vst [vmem:[%s200_s22] sm:$0xff] %v337_v61 }
 0x1ec   : > { %634 = shalt.err (!%p631_p0)
}
 0x1ed   : > { %s635_s9 = scalar_lea.hbm %s351_s29, 128  ;;  %s639_s21 = scalar_lea.hbm %s888_s3, 256 }
 0x1ee   : > { %p636_p5 = scmp.ne.s32.totalorder %s351_s29, %s635_s9  ;;  %p640_p1 = scmp.lt.s32.totalorder %s351_s29, %s888_s3 }
 0x1ef   : > { %p641_p4 = scmp.lt.s32.totalorder %s639_s21, %s635_s9 }
 0x1f0   : > { %p637_p9 = pnand %p636_p5, %p904_p3 }
 0x1f1   : > { %p642_p6 = por %p641_p4, %p640_p1 }
 0x1f2   : > { %p638_p12 = pneg %p637_p9 }
 0x1f4   : > { %p643_p8 = pnand %p642_p6, %p638_p12 }
 0x1f6   : > { %646 = shalt.err (!%p643_p8)
}
 0x1f7   : > { %506 = dma.vmem_to_hbm [thread:$0]  (%p904_p3), %s354_s23, 128, %s351_s29, %s340_s30  }
 0x1f8 PF: > { %s365_s18 = sand.u32 1, %s677_s12   ;;  %p905_p11 = scmp.ne.s32.totalorder %s894_s19, 0 }
 0x1f9   : > { %p906_p7 = scmp.ge.s32.totalorder %s689_s15, 2  ;;  %s366_s20 = scalar_lea.sflag [#allocation4], %s365_s18 }
 0x1fb   : > { %p517_p10 = pnand %p906_p7, %p905_p11 }
 0x1fd   : > { %p518_p2 = pneg %p517_p10 }
 0x1ff   : > { %672 = dma.done.wait (%p518_p2), %s366_s20, 128  }
 0x200   : > { %674 = vsyncadd (%p518_p2), %s366_s20, 4294967168  ;;  %p17_p13 = scmp.ge.s32.totalorder %s772_s24, 4   ;;  %s907_s12 = smov %s681_s13 }
 0x201   : > { %s908_s13 = smov %s685_s14  ;;  %s909_s14 = smov %s789_s5 }
 0x202   : > { %s910_s15 = smov %s772_s24  ;;  %19 = sbr.rel (!%p17_p13) target bundleno = 6 (0x6), region = 81 }
 0x207   :  { %371 = vsyncpa [#allocation3], 1 }
 0x208   :  { %373 = vsyncpa [#allocation3 + $0x1], 1 }
 0x209   :  { %374 = vsyncpa [#allocation6], 1 }
 0x20a   :  { %375 = vsyncpa [#allocation4], 1 }
 0x20b   :  { %377 = vsyncpa [#allocation4 + $0x1], 1 }

</bundles_post_ra>
